<compile_context>
chip_gen: v7x
topology: tpu7x:2x2x1
jax: 0.10.0
libtpu: 0.0.40
codegen_flags: <defaults>
</compile_context>

<pallas_src>
import math
from functools import partial

import numpy as np
import jax
import jax.numpy as jnp
from jax import lax
from jax.experimental import pallas as pl
from jax.experimental.pallas import tpu as pltpu

# Deterministic "parameters": the blur tap [1, 2, 1] as in Blur.__init__,
# expanded to the 3x3x3 outer product and normalized (sum = 64).  Used only by
# the pure-JAX reference.
_F1 = np.array([1.0, 2.0, 1.0], dtype=np.float32)
_W3 = np.einsum("i,j,k->ijk", _F1, _F1, _F1)
_W3 = _W3 / _W3.sum()


def _blur3d_kernel(x_ref, o_ref, *, D, H, W):
    """Separable [1,2,1]^3 blur with replicate borders on a (R, H*W) tile.

    R = bc_tile * D rows, channel-major: channel boundaries fall every D rows,
    so tile boundaries always coincide with channel boundaries.
    """
    HW = H * W
    R = x_ref.shape[0]
    x = x_ref[...].astype(jnp.float32)                       # (R, HW) f32 acc

    # Lane-only masks (1, HW): broadcast along rows inside jnp.where.  No
    # full-tile iota / modulo / bool arrays -> minimal VMEM & VALU pressure.
    lane = lax.broadcasted_iota(jnp.int32, (1, HW), 1)
    w_idx = (lane & (W - 1)) if (W & (W - 1)) == 0 else (lane % W)
    is_w_lo = w_idx == 0                 # w == 0     -> replicate left
    is_w_hi = w_idx == W - 1             # w == W-1   -> replicate right
    is_h_lo = lane < W                   # h == 0     -> replicate up
    is_h_hi = lane >= (H - 1) * W        # h == H-1   -> replicate down

    # Row masks (R, 1): replicate at channel-local d == 0 / d == D-1.  This
    # also discards roll wrap-around values across channel / tile boundaries.
    row = lax.broadcasted_iota(jnp.int32, (R, 1), 0)
    d_idx = row % D
    is_d_lo = d_idx == 0
    is_d_hi = d_idx == D - 1

    # ---- W pass: y = x[w-1] + 2*x[w] + x[w+1], replicate edges (lane rolls).
    x = (jnp.where(is_w_lo, x, pltpu.roll(x, 1, axis=1))
         + jnp.where(is_w_hi, x, pltpu.roll(x, HW - 1, axis=1))
         + (x + x))

    # ---- H pass: same along h (lane rolls by +-W).
    x = (jnp.where(is_h_lo, x, pltpu.roll(x, W, axis=1))
         + jnp.where(is_h_hi, x, pltpu.roll(x, HW - W, axis=1))
         + (x + x))

    # ---- D pass: same along d via sublane rolls (XLU slot), no concat copies.
    x = (jnp.where(is_d_lo, x, pltpu.roll(x, 1, axis=0))
         + jnp.where(is_d_hi, x, pltpu.roll(x, R - 1, axis=0))
         + (x + x))

    # Normalization of the [1,2,1]^3 kernel (sum = 64), folded into one mul.
    o_ref[...] = (x * (1.0 / 64.0)).astype(o_ref.dtype)


def _vmem_limit_bytes():
    """Explicit scoped-VMEM limit: ~75% of per-core capacity, capped at 100 MiB
    (v5e/v6e: 128 MiB physical -> 96 MiB; v7x: 64 MiB physical -> 48 MiB)."""
    try:
        cap = pltpu.get_tpu_info().vmem_capacity_bytes
    except Exception:
        cap = 64 * 1024 * 1024
    return int(min(cap * 3 // 4, 100 * 1024 * 1024))


def _pick_bc_tile(BC, D, per_chan_cost, budget_bytes):
    """Channels per grid step.

    Keeps >= 2 grid steps (so both v7x TensorCores get work), prefers tiles
    whose row count bc_tile*D is a multiple of 8 (sublane-aligned), prefers
    exact divisors of BC (no padding), and fits the VMEM budget that already
    accounts for in-kernel f32 temporaries.
    """
    max_fit = max(1, int(budget_bytes // max(1, per_chan_cost)))
    cap = max(1, -(-BC // 2))                       # cdiv(BC, 2): >= 2 steps
    t = max(1, min(BC, max_fit, cap))
    step = 8 // math.gcd(D, 8)                      # channels per 8-aligned row group

    div_aligned = next((c for c in range(t, 0, -1)
                        if BC % c == 0 and (c * D) % 8 == 0), 0)
    pad_aligned = (t // step) * step                # needs BC padding in wrapper
    div_any = next(c for c in range(t, 0, -1) if BC % c == 0)

    if div_aligned and 2 * div_aligned >= max(pad_aligned, div_any):
        return div_aligned
    if pad_aligned and 2 * pad_aligned >= div_any:
        return pad_aligned
    if (div_any * D) % 8 == 0 or div_any == BC:
        return div_any
    return BC   # degenerate fallback: whole-array tile keeps the BlockSpec legal


def blur(x):
    """Equivalent of Blur()(x) for x of shape (B, C, D, H, W)."""
    B, C, D, H, W = x.shape
    BC, HW = B * C, H * W
    itemsize = jnp.dtype(x.dtype).itemsize

    vmem_limit = _vmem_limit_bytes()
    # Per-channel VMEM cost: double-buffered in + out I/O tiles at the I/O
    # dtype (4x) plus ~6 live tile-sized f32 temporaries inside the kernel
    # (f32 copy of x, two rolled copies, partial sums); masks are only
    # (1, HW) / (R, 1) so they are negligible.
    per_chan_cost = 4 * D * HW * itemsize + 6 * D * HW * 4
    budget = int(vmem_limit * 0.6)
    bc_tile = _pick_bc_tile(BC, D, per_chan_cost, budget)
    # TODO(synk): for huge single-channel volumes where even bc_tile == 1
    # exceeds the budget, additionally split D with a 1-plane halo (overlapping
    # blocks via manual make_async_copy double-buffering).
    # TODO(synk): if HW is not a multiple of 128, re-pack the layout (fold part
    # of D into the lane axis or pad W) to keep the output spec lane-dense.

    bc_pad = -(-BC // bc_tile) * bc_tile
    xr = x.reshape(BC * D, HW)                     # lane-dense, no D sublane pad
    if bc_pad != BC:                               # cheap HBM zero-pad, sliced off
        xr = jnp.pad(xr, ((0, (bc_pad - BC) * D), (0, 0)))

    rows_tile = bc_tile * D
    out = pl.pallas_call(
        partial(_blur3d_kernel, D=D, H=H, W=W),
        out_shape=jax.ShapeDtypeStruct((bc_pad * D, HW), x.dtype),
        grid=(bc_pad // bc_tile,),
        in_specs=[pl.BlockSpec((rows_tile, HW), lambda i: (i, 0))],
        out_specs=pl.BlockSpec((rows_tile, HW), lambda i: (i, 0)),
        compiler_params=pltpu.CompilerParams(
            dimension_semantics=("parallel",),
            vmem_limit_bytes=vmem_limit),
    )(xr)
    if bc_pad != BC:
        out = out[: BC * D]
    return out.reshape(B, C, D, H, W)


def _blur_reference(x):
    """Pure-JAX 27-tap reference (kornia filter3d, normalized, replicate pad)
    — independent check of the separable/rolled rewrite."""
    B, C, D, H, W = x.shape
    xf = x.reshape(B * C, D, H, W)
    xp = jnp.pad(xf, ((0, 0), (1, 1), (1, 1), (1, 1)), mode="edge")
    acc = jnp.zeros_like(xf, dtype=jnp.float32)
    for dz in range(3):
        for dy in range(3):
            for dx in range(3):
                acc = acc + float(_W3[dz, dy, dx]) * \
                    xp[:, dz:dz + D, dy:dy + H, dx:dx + W].astype(jnp.float32)
    return acc.astype(x.dtype).reshape(B, C, D, H, W)


if __name__ == "__main__":
    # TODO(synk): before generalizing beyond this geometry, add reference tests
    # with non-power-of-two W, HW not a multiple of 128, other D, and bf16 I/O.
    key = jax.random.PRNGKey(0)
    B, C, D, H, W = 2, 4, 6, 8, 16      # HW = 128 (lane-dense), BC = 8 -> grid 2
    x = jax.random.normal(key, (B, C, D, H, W), dtype=jnp.float32)

    y = blur(x)
    jax.block_until_ready(y)

    y_ref = _blur_reference(x)
    assert y.shape == (B, C, D, H, W)
    np.testing.assert_allclose(np.asarray(y), np.asarray(y_ref),
                               rtol=1e-5, atol=1e-5)
    print("KERNEL_OK")
</pallas_src>

<mosaic_0001>
module attributes {stable_mosaic.version = 11 : i64} {
  func.func @_blur3d_kernel(%arg0: i32, %arg1: memref<24x128xf32, #tpu.memory_space<vmem>>, %arg2: memref<24x128xf32, #tpu.memory_space<vmem>>) attributes {dimension_semantics = [#tpu.dimension_semantics<parallel>], iteration_bounds = array<i64: 2>, scalar_prefetch = 0 : i64, scratch_operands = 0 : i64, tpu.core_type = #tpu.core_type<tc>, window_params = [{transform_indices = @transform_0, window_bounds = array<i64: 24, 128>}, {transform_indices = @transform_1, window_bounds = array<i64: 24, 128>}]} {
    %c0 = arith.constant 0 : index
    %c0_0 = arith.constant 0 : index
    %0 = vector.load %arg1[%c0, %c0_0] : memref<24x128xf32, #tpu.memory_space<vmem>>, vector<24x128xf32>
    %1 = tpu.iota {dimensions = array<i32: 1>} : vector<1x128xi32>
    %c15_i32 = arith.constant 15 : i32
    %2 = vector.broadcast %c15_i32 : i32 to vector<1x128xi32>
    %3 = arith.andi %1, %2 : vector<1x128xi32>
    %c0_i32 = arith.constant 0 : i32
    %4 = vector.broadcast %c0_i32 : i32 to vector<1x128xi32>
    %5 = arith.cmpi eq, %3, %4 : vector<1x128xi32>
    %c15_i32_1 = arith.constant 15 : i32
    %6 = vector.broadcast %c15_i32_1 : i32 to vector<1x128xi32>
    %7 = arith.cmpi eq, %3, %6 : vector<1x128xi32>
    %c16_i32 = arith.constant 16 : i32
    %8 = vector.broadcast %c16_i32 : i32 to vector<1x128xi32>
    %9 = arith.cmpi slt, %1, %8 : vector<1x128xi32>
    %c112_i32 = arith.constant 112 : i32
    %10 = vector.broadcast %c112_i32 : i32 to vector<1x128xi32>
    %11 = arith.cmpi sge, %1, %10 : vector<1x128xi32>
    %12 = tpu.iota {dimensions = array<i32: 0>} : vector<24x1xi32>
    %c6_i32 = arith.constant 6 : i32
    %c0_i32_2 = arith.constant 0 : i32
    %13 = arith.cmpi eq, %c6_i32, %c0_i32_2 : i32
    %c1_i32 = arith.constant 1 : i32
    %14 = arith.select %13, %c1_i32, %c6_i32 : i32
    %15 = vector.broadcast %14 : i32 to vector<24x1xi32>
    %16 = arith.remsi %12, %15 : vector<24x1xi32>
    %c0_i32_3 = arith.constant 0 : i32
    %17 = vector.broadcast %c0_i32_3 : i32 to vector<24x1xi32>
    %18 = arith.cmpi ne, %16, %17 : vector<24x1xi32>
    %c0_i32_4 = arith.constant 0 : i32
    %19 = vector.broadcast %c0_i32_4 : i32 to vector<24x1xi32>
    %20 = arith.cmpi slt, %16, %19 : vector<24x1xi32>
    %c0_i32_5 = arith.constant 0 : i32
    %21 = arith.cmpi slt, %14, %c0_i32_5 : i32
    %22 = vector.broadcast %21 : i1 to vector<24x1xi1>
    %23 = vector.broadcast %22 : vector<24x1xi1> to vector<24x1xi1>
    %24 = arith.xori %20, %23 : vector<24x1xi1>
    %25 = arith.andi %24, %18 : vector<24x1xi1>
    %26 = vector.broadcast %14 : i32 to vector<24x1xi32>
    %27 = arith.addi %16, %26 : vector<24x1xi32>
    %28 = arith.select %25, %27, %16 : vector<24x1xi1>, vector<24x1xi32>
    %c0_i32_6 = arith.constant 0 : i32
    %29 = vector.broadcast %c0_i32_6 : i32 to vector<24x1xi32>
    %30 = arith.cmpi eq, %28, %29 : vector<24x1xi32>
    %c5_i32 = arith.constant 5 : i32
    %31 = vector.broadcast %c5_i32 : i32 to vector<24x1xi32>
    %32 = arith.cmpi eq, %28, %31 : vector<24x1xi32>
    %c1_i32_7 = arith.constant 1 : i32
    %33 = tpu.dynamic_rotate %0 by %c1_i32_7 dim 1 : vector<24x128xf32>, i32 -> vector<24x128xf32>
    %34 = vector.shape_cast %5 : vector<1x128xi1> to vector<1x128xi1>
    %35 = vector.broadcast %34 : vector<1x128xi1> to vector<24x128xi1>
    %36 = arith.select %35, %0, %33 : vector<24x128xi1>, vector<24x128xf32>
    %c127_i32 = arith.constant 127 : i32
    %37 = tpu.dynamic_rotate %0 by %c127_i32 dim 1 : vector<24x128xf32>, i32 -> vector<24x128xf32>
    %38 = vector.shape_cast %7 : vector<1x128xi1> to vector<1x128xi1>
    %39 = vector.broadcast %38 : vector<1x128xi1> to vector<24x128xi1>
    %40 = arith.select %39, %0, %37 : vector<24x128xi1>, vector<24x128xf32>
    %41 = arith.addf %36, %40 : vector<24x128xf32>
    %42 = arith.addf %0, %0 : vector<24x128xf32>
    %43 = arith.addf %41, %42 : vector<24x128xf32>
    %c16_i32_8 = arith.constant 16 : i32
    %44 = tpu.dynamic_rotate %43 by %c16_i32_8 dim 1 : vector<24x128xf32>, i32 -> vector<24x128xf32>
    %45 = vector.shape_cast %9 : vector<1x128xi1> to vector<1x128xi1>
    %46 = vector.broadcast %45 : vector<1x128xi1> to vector<24x128xi1>
    %47 = arith.select %46, %43, %44 : vector<24x128xi1>, vector<24x128xf32>
    %c112_i32_9 = arith.constant 112 : i32
    %48 = tpu.dynamic_rotate %43 by %c112_i32_9 dim 1 : vector<24x128xf32>, i32 -> vector<24x128xf32>
    %49 = vector.shape_cast %11 : vector<1x128xi1> to vector<1x128xi1>
    %50 = vector.broadcast %49 : vector<1x128xi1> to vector<24x128xi1>
    %51 = arith.select %50, %43, %48 : vector<24x128xi1>, vector<24x128xf32>
    %52 = arith.addf %47, %51 : vector<24x128xf32>
    %53 = arith.addf %43, %43 : vector<24x128xf32>
    %54 = arith.addf %52, %53 : vector<24x128xf32>
    %c1_i32_10 = arith.constant 1 : i32
    %55 = tpu.dynamic_rotate %54 by %c1_i32_10 dim 0 : vector<24x128xf32>, i32 -> vector<24x128xf32>
    %56 = vector.shape_cast %30 : vector<24x1xi1> to vector<24x1xi1>
    %57 = vector.broadcast %56 : vector<24x1xi1> to vector<24x128xi1>
    %58 = arith.select %57, %54, %55 : vector<24x128xi1>, vector<24x128xf32>
    %c23_i32 = arith.constant 23 : i32
    %59 = tpu.dynamic_rotate %54 by %c23_i32 dim 0 : vector<24x128xf32>, i32 -> vector<24x128xf32>
    %60 = vector.shape_cast %32 : vector<24x1xi1> to vector<24x1xi1>
    %61 = vector.broadcast %60 : vector<24x1xi1> to vector<24x128xi1>
    %62 = arith.select %61, %54, %59 : vector<24x128xi1>, vector<24x128xf32>
    %63 = arith.addf %58, %62 : vector<24x128xf32>
    %64 = arith.addf %54, %54 : vector<24x128xf32>
    %65 = arith.addf %63, %64 : vector<24x128xf32>
    %cst = arith.constant 1.562500e-02 : f32
    %66 = vector.broadcast %cst : f32 to vector<24x128xf32>
    %67 = arith.mulf %65, %66 : vector<24x128xf32>
    %c0_11 = arith.constant 0 : index
    %c0_12 = arith.constant 0 : index
    %68 = vector.load %arg2[%c0_11, %c0_12] : memref<24x128xf32, #tpu.memory_space<vmem>>, vector<24x128xf32>
    tpu.vector_store %arg2[%c0_11, %c0_12], %67 {strides = array<i32>} : memref<24x128xf32, #tpu.memory_space<vmem>>, vector<24x128xf32>,
    return
  }
  func.func @transform_0(%arg0: i32) -> (i32, i32) {
    %c0_i32 = arith.constant 0 : i32
    %c0_i32_0 = arith.constant 0 : i32
    return %arg0, %c0_i32 : i32, i32
  }
  func.func @transform_1(%arg0: i32) -> (i32, i32) {
    %c0_i32 = arith.constant 0 : i32
    %c0_i32_0 = arith.constant 0 : i32
    return %arg0, %c0_i32 : i32, i32
  }
}

</mosaic_0001>

<bundles_post_ra>
// kernel: tpu_custom_call.1
= control target key start
LH: loop header
LB: loop body
LE: loop exit
PB: predicated region body
PF: predicated region fallthrough
CT: control target
= control target key end

     0   :  { %6 = vsyncpa [#allocation3], 0  ;;  %s829_s0 = inlined_call_operand.hbm [shape: f32[48,128], index: 0, kind: input, shape index: {}]   ;;  %s830_s1 = inlined_call_operand.hbm [shape: f32[48,128], index: 1, kind: output, shape index: {}]  }
   0x1   :  { %8 = vsyncpa [#allocation3 + $0x1], 0 }
   0x2   :  { %9 = vsyncpa [#allocation4], 0 }
   0x3   :  { %11 = vsyncpa [#allocation4 + $0x1], 0  ;;  %s591_s6 = smov 0   ;;  %s593_s7 = smov 0  }
   0x4   :  { %s595_s8 = smov 0   ;;  %s597_s9 = smov 0  }
   0x5 LB: > { %s612_s10 = sadd.s32 4294967295, %s569_s9   ;;  %s401_s11 = sadd.s32 4294967294, %s569_s9   ;;  %s569_s9 = sphi %s597_s9, %s846_s9   ;;  %s565_s8 = sphi %s595_s8, %s845_s8   ;;  %s561_s7 = sphi %s593_s7, %s844_s7   ;;  %s557_s6 = sphi %s591_s6, %s843_s6  }
   0x6   : > { %s616_s12 = sadd.s32 1, %s569_s9   ;;  %s24_s13 = sadd.s32 1, %s565_s8 }
   0x7   : > { %s21_s14 = ssub.s32 %s569_s9, %s616_s12  ;;  %p31_p0 = scmp.ne.s32.totalorder %s565_s8, %s561_s7 }
   0x8   : > { %p22_p1 = scmp.eq.s32.totalorder %s21_s14, 0  ;;  %p32_p2 = scmp.eq.s32.totalorder %s569_s9, 0 }
   0x9   : > { %p37_p3 = scmp.ne.s32.totalorder %s561_s7, %s557_s6  ;;  %p38_p4 = scmp.eq.s32.totalorder %s612_s10, 0 }
   0xa   : > { %s628_s15 = scalar_select %p22_p1, %s565_s8, %s24_s13  }
   0xb   : > { %p33_p5 = por %p32_p2, %p31_p0  ;;  %p630_p6 = por %p38_p4, %p37_p3 }
   0xc   : > { %p61_p7 = scmp.eq.s32.totalorder %s612_s10, 1  ;;  %p67_p8 = scmp.eq.s32.totalorder %s401_s11, 1 }
   0xd   : > { %p431_p10 = scmp.lt.s32.totalorder %s569_s9, 2  ;;  %s87_s19 = sand.u32 1, %s565_s8  }
   0xe   : > { %p637_p11 = por %p61_p7, %p31_p0  ;;  %p641_p12 = por %p67_p8, %p37_p3 }
   0xf   : > { %s409_s20 = smul.u32 384, %s569_s9  ;;  %p652_p13 = pnand %p431_p10, %p33_p5 }
  0x10   : > { %s833_s17 = scalar_select %p637_p11, 1, 0 }
  0x11   : > { %s834_s18 = scalar_select %p641_p12, 1, 0 }
  0x12   : > { %s411_s21 = smul.u32 24, %s87_s19  ;;  %s650_s24 = scalar_lea.hbm %s829_s0, %s409_s20 }
  0x13   : > { %s658_s28 = scalar_lea.sflag [#allocation3], %s87_s19  ;;  %s473_s29 = scalar_lea.hbm %s650_s24, 384 }
  0x14   : > { %s91_s26 = scalar_lea.vmem [#allocation2], %s411_s21  ;;  %p474_p0 = scmp.ne.s32.totalorder %s650_s24, %s473_s29 }
  0x15   : > { %s98_s27 = sshll.u32 %s91_s26, 4  ;;  %p475_p1 = pneg %p652_p13  ;;  %s656_s27 = int_to_ptr.vmem [resolvable:$true] %s98_s27 }
  0x16   : > { %s478_s3 = scalar_lea.hbm %s829_s0, 768  ;;  %p479_p4 = scmp.lt.u32.totalorder %s650_s24, %s829_s0 }
  0x17   : > { %p476_p2 = pnand %p475_p1, %p474_p0  ;;  %p480_p5 = scmp.lt.u32.totalorder %s478_s3, %s473_s29 }
  0x18   : > { %p482_p8 = scmp.lt.u32.totalorder %s473_s29, %s650_s24 }
  0x19   : > { %p477_p3 = pneg %p476_p2  ;;  %p481_p7 = por %p480_p5, %p479_p4 }
  0x1b   : > { %p483_p10 = por %p482_p8, %p481_p7 }
  0x1d   : > { %p484_p9 = pnand %p483_p10, %p477_p3 }
  0x1f   : > { %487 = shalt.err (!%p484_p9)
}
  0x20   : > { %s488_s11 = scalar_lea.vmem %s656_s27, 384  ;;  %s571_s13 = smov [#allocation2]  }
  0x21   : > { %p489_p0 = scmp.ne.s32.totalorder %s656_s27, %s488_s11  ;;  %s493_s14 = sshll.u32 %s571_s13, 4  ;;  %s494_s14 = int_to_ptr.vmem [resolvable:$false] %s493_s14 }
  0x22   : > { %s495_s19 = scalar_lea.vmem %s494_s14, 768  ;;  %p496_p11 = scmp.lt.s32.totalorder %s656_s27, %s494_s14 }
  0x23   : > { %p491_p2 = pnand %p489_p0, %p475_p1  ;;  %p497_p4 = scmp.lt.s32.totalorder %s495_s19, %s488_s11 }
  0x25   : > { %p492_p12 = pneg %p491_p2  ;;  %p498_p5 = por %p497_p4, %p496_p11 }
  0x27   : > { %p499_p7 = pnand %p498_p5, %p492_p12 }
  0x29   : > { %502 = shalt.err (!%p499_p7)
}
  0x2a   : > { %s572_s20 = smov 128   ;;  %s573_s21 = smov 8  }
  0x2b   : > { %426 = dma.hbm_to_vmem [thread:$0]  (!%p652_p13), %s650_s24, 384, %s656_s27, %s658_s28, %s572_s20, %s572_s20, %s573_s21  }
  0x2c   : > { %p405_p9 = scmp.ge.s32.totalorder %s569_s9, 1  ;;  %p106_p1 = scmp.lt.s32.totalorder %s569_s9, 3 }
  0x2e   : > { %p107_p3 = pnand %p405_p9, %p106_p1 }
  0x2f   : > { %s689_s22 = sand.u32 (!%p107_p3), 1, %s561_s7  }
  0x30   : > { %110 = sbr.rel (%p107_p3) target bundleno = 340 (0x154), region = 24  ;;  %s113_s26 = scalar_lea.sflag (!%p107_p3), [#allocation3], %s689_s22 }
  0x31   : > { %s412_s23 = smul.u32 (!%p107_p3), 24, %s689_s22 }
  0x33   : > { %s116_s29 = scalar_lea.vmem (!%p107_p3), [#allocation2], %s412_s23 }
  0x37   : > { %548 = dma.done.wait (%p630_p6), %s113_s26, 384  }
  0x38   : > { %550 = vsyncadd (%p630_p6), %s113_s26, 4294966912  ;;  %v139_v0 = vld [vmem:[%s116_s29 + $0x10] sm:$0xff]  ;;  %v137_v1 = vld [vmem:[%s116_s29] sm:$0xff]  ;;  %s574_s24 = smov 1   ;;  %s575_s25 = smov 127   ;;  %v140_v3 = vlaneseq }
  0x39   : > { %209 = vrot.lane.b32.xlu1 %v139_v0, %s574_s24  ;;  %205 = vrot.lane.b32.xlu0 %v137_v1, %s574_s24  ;;  %v138_v2 = vld [vmem:[%s116_s29 + $0x8] sm:$0xff]  ;;  %v230_v11 = vadd.f32 %v137_v1, %v137_v1  ;;  %v232_v17 = vadd.f32 %v139_v0, %v139_v0  ;;  %s576_s16 = smov 16   ;;  %s577_s27 = smov 112  }
  0x3a   : > { %v699_v4 = vand.u32 127, %v140_v3  ;;  %v231_v19 = vadd.f32 %v138_v2, %v138_v2  ;;  %v726_v29 = vshrl.u32 %v140_v3, 7  ;;  %s410_s28 = smul.u32 384, %s612_s10  ;;  %s134_s30 = scalar_lea.vmem [#allocation5], %s412_s23 }
  0x3b   : > { %s328_s2 = sshll.u32 %s134_s30, 4  ;;  %s315_s10 = scalar_lea.sflag [#allocation4], %s689_s22  ;;  %s785_s2 = int_to_ptr.vmem [resolvable:$true] %s328_s2 }
  0x3c   : > { %v142_v5 = vand.u32 15, %v699_v4  ;;  %v149_v30 = vadd.s32 8, %v726_v29  ;;  %v730_v31 = vmul.u32.u64.low 2863311531, %v726_v29  ;;  %v731_v32 = vmul.u32.u64.high 2863311531, %v726_v29, %v730_v31  ;;  %s783_s5 = scalar_lea.hbm %s830_s1, %s410_s28  ;;  %s503_s11 = scalar_lea.vmem %s785_s2, 384 }
  0x3d   : > { %216 = vrot.lane.b32.xlu1 %v137_v1, %s575_s25  ;;  %207 = vrot.lane.b32.xlu0 %v138_v2, %s574_s24  ;;  %v150_v33 = vadd.s32 16, %v726_v29  ;;  %vm145_vm2 = vcmp.lt.s32.totalorder %v699_v4, 16  ;;  %vm146_vm3 = vcmp.ge.s32.totalorder %v699_v4, 112  ;;  %vm270_vm12 = vcmp.lt.s32.totalorder %v726_v29, 1  ;;  %p504_p6 = scmp.ne.s32.totalorder %s785_s2, %s503_s11  ;;  %p840_p11 = scmp.ne.s32.totalorder %s833_s17, 0 }
  0x3e   : > { %vm702_vm0 = vcmp.eq.s32.totalorder %v142_v5, 0  ;;  %vm706_vm1 = vcmp.eq.s32.totalorder %v142_v5, 15  ;;  %v734_v34 = vmul.u32.u64.low 2863311531, %v149_v30  ;;  %v735_v35 = vmul.u32.u64.high 2863311531, %v149_v30, %v734_v34  ;;  %s578_s13 = smov [#allocation5]  }
  0x3f   : > { %v737_v36 = vmul.u32.u64.low 2863311531, %v150_v33  ;;  %v738_v37 = vmul.u32.u64.high 2863311531, %v150_v33, %v737_v36  ;;  %v157_v38 = vshrl.u32 %v731_v32, 2  ;;  %vm286_vm13 = vcmp.lt.s32.totalorder %v726_v29, 7  ;;  %p505_p12 = pnand %p504_p6, %p840_p11  ;;  %s507_s14 = sshll.u32 %s578_s13, 4  ;;  %s508_s14 = int_to_ptr.vmem [resolvable:$false] %s507_s14 }
  0x40   : > { %v168_v39 = vshrl.u32 %v735_v35, 2  ;;  %s509_s19 = scalar_lea.vmem %s508_s14, 768  ;;  %p510_p8 = scmp.lt.s32.totalorder %s785_s2, %s508_s14 }
  0x41   : > { %220 = vrot.lane.b32.xlu1 %v139_v0, %s575_s25  ;;  %218 = vrot.lane.b32.xlu0 %v138_v2, %s575_s25  ;;  %v158_v40 = vmul.u32 6, %v157_v38  ;;  %v179_v41 = vshrl.u32 %v738_v37, 2  ;;  %p506_p13 = pneg %p505_p12  ;;  %p511_p10 = scmp.lt.s32.totalorder %s509_s19, %s503_s11 }
  0x42   : > { %v169_v42 = vmul.u32 6, %v168_v39 }
  0x43   : > { %v159_v44 = vsub.s32 %v726_v29, %v158_v40  ;;  %v180_v45 = vmul.u32 6, %v179_v41  ;;  %p512_p0 = por %p511_p10, %p510_p8 }
  0x44   : > { %v170_v46 = vsub.s32 %v149_v30, %v169_v42 }
  0x45   : > { %vm184_vm4 = vcmp.ne.s32.totalorder %v159_v44, 0  ;;  %vm187_vm5 = vcmp.lt.s32.totalorder %v159_v44, 0  ;;  %v181_v49 = vsub.s32 %v150_v33, %v180_v45  ;;  %v193_v52 = vadd.s32 6, %v159_v44  ;;  %p513_p2 = pnand %p512_p0, %p506_p13 }
  0x46   : > { %vm185_vm6 = vcmp.ne.s32.totalorder %v170_v46, 0  ;;  %vm188_vm7 = vcmp.lt.s32.totalorder %v170_v46, 0  ;;  %v194_v53 = vadd.s32 6, %v170_v46  ;;  %vm190_vm8 = vmand %vm187_vm5, %vm184_vm4 }
  0x47   : > { %vm191_vm9 = vmand %vm188_vm7, %vm185_vm6  ;;  %vm186_vm10 = vcmp.ne.s32.totalorder %v181_v49, 0  ;;  %vm189_vm11 = vcmp.lt.s32.totalorder %v181_v49, 0 }
  0x48   : > { %v197_v3 = vsel %vm191_vm9, %v194_v53, %v170_v46  ;;  %vm192_vm14 = vmand %vm189_vm11, %vm186_vm10 }
  0x49   : > { %vm200_vm15 = vcmp.eq.s32.totalorder %v197_v3, 0 }
  0xab   : > { %v210_v6 = vpop.permute.xlu1 %209  ;;  %v206_v7 = vpop.permute.xlu0 %205 }
  0xac   : > { %v213_v13 = vsel %vm702_vm0, %v137_v1, %v206_v7  ;;  %v215_v21 = vsel %vm702_vm0, %v139_v0, %v210_v6 }
  0xaf   : > { %v217_v10 = vpop.permute.xlu1 %216  ;;  %v208_v12 = vpop.permute.xlu0 %207 }
  0xb0   : > { %v224_v14 = vsel %vm706_vm1, %v137_v1, %v217_v10  ;;  %v214_v22 = vsel %vm702_vm0, %v138_v2, %v208_v12 }
  0xb1   : > { %v227_v15 = vadd.f32 %v224_v14, %v213_v13 }
  0xb3   : > { %v233_v16 = vadd.f32 %v230_v11, %v227_v15  ;;  %v221_v18 = vpop.permute.xlu1 %220  ;;  %v219_v20 = vpop.permute.xlu0 %218 }
  0xb4   : > { %v226_v23 = vsel %vm706_vm1, %v139_v0, %v221_v18  ;;  %v225_v24 = vsel %vm706_vm1, %v138_v2, %v219_v20  ;;  %v195_v0 = vadd.s32 6, %v181_v49  ;;  %v196_v2 = vsel %vm190_vm8, %v193_v52, %v159_v44 }
  0xb5   : > { %v229_v25 = vadd.f32 %v226_v23, %v215_v21  ;;  %v228_v26 = vadd.f32 %v225_v24, %v214_v22  ;;  %236 = vrot.lane.b32.xlu0 %v233_v16, %s576_s16  ;;  %v261_v51 = vadd.f32 %v233_v16, %v233_v16  ;;  %vm202_vm0 = vcmp.eq.s32.totalorder %v196_v2, 5 }
  0xb6   : > { %v198_v13 = vsel %vm192_vm14, %v195_v0, %v181_v49  ;;  %vm203_vm1 = vcmp.eq.s32.totalorder %v197_v3, 5 }
  0xb7   : > { %v722_v27 = vadd.f32 %v232_v17, %v229_v25  ;;  %v234_v28 = vadd.f32 %v231_v19, %v228_v26  ;;  %vm204_vm4 = vcmp.eq.s32.totalorder %v198_v13, 5 }
  0xb9   : > { %238 = vrot.lane.b32.xlu1 %v234_v28, %s576_s16  ;;  %240 = vrot.lane.b32.xlu0 %v722_v27, %s576_s16  ;;  %v262_v54 = vadd.f32 %v234_v28, %v234_v28  ;;  %v263_v11 = vadd.f32 %v722_v27, %v722_v27 }
  0xbd   : > { %247 = vrot.lane.b32.xlu1 %v233_v16, %s577_s27  ;;  %249 = vrot.lane.b32.xlu0 %v234_v28, %s577_s27 }
  0xc1   : > { %251 = vrot.lane.b32.xlu1 %v722_v27, %s577_s27 }
 0x127   : > { %v237_v43 = vpop.permute.xlu0 %236 }
 0x128   : > { %v244_v56 = vsel %vm145_vm2, %v233_v16, %v237_v43 }
 0x12b   : > { %v239_v47 = vpop.permute.xlu1 %238  ;;  %v241_v48 = vpop.permute.xlu0 %240 }
 0x12c   : > { %v245_v57 = vsel %vm145_vm2, %v234_v28, %v239_v47  ;;  %v246_v6 = vsel %vm145_vm2, %v722_v27, %v241_v48  ;;  %vm199_vm2 = vcmp.eq.s32.totalorder %v196_v2, 0 }
 0x12f   : > { %v248_v50 = vpop.permute.xlu1 %247  ;;  %v250_v55 = vpop.permute.xlu0 %249 }
 0x130   : > { %v255_v58 = vsel %vm146_vm3, %v233_v16, %v248_v50  ;;  %v256_v59 = vsel %vm146_vm3, %v234_v28, %v250_v55 }
 0x131   : > { %v258_v60 = vadd.f32 %v255_v58, %v244_v56  ;;  %v259_v61 = vadd.f32 %v256_v59, %v245_v57 }
 0x133   : > { %v264_v62 = vadd.f32 %v261_v51, %v258_v60  ;;  %v265_v63 = vadd.f32 %v262_v54, %v259_v61  ;;  %v252_v1 = vpop.permute.xlu1 %251 }
 0x134   : > { %v257_v5 = vsel %vm146_vm3, %v722_v27, %v252_v1  ;;  %vm201_vm3 = vcmp.eq.s32.totalorder %v198_v13, 0 }
 0x135   : > { %v267_v7 = vrot.slane %v264_v62, 7  ;;  %v283_v8 = vrot.slane %v264_v62, 1  ;;  %v268_v9 = vrot.slane %v265_v63, 7  ;;  %v284_v10 = vrot.slane %v265_v63, 1 }
 0x136   : > { %v260_v12 = vadd.f32 %v257_v5, %v246_v6  ;;  %v302_v18 = vadd.f32 %v264_v62, %v264_v62  ;;  %v303_v21 = vadd.f32 %v265_v63, %v265_v63 }
 0x137   : > { %v272_v14 = vsel %vm270_vm12, %v267_v7, %v268_v9  ;;  %v288_v15 = vsel %vm286_vm13, %v283_v8, %v284_v10 }
 0x138   : > { %v266_v16 = vadd.f32 %v263_v11, %v260_v12  ;;  %v281_v19 = vsel %vm200_vm15, %v265_v63, %v272_v14  ;;  %v296_v20 = vsel %vm202_vm0, %v264_v62, %v288_v15 }
 0x13a   : > { %v269_v4 = vrot.slane %v266_v16, 7  ;;  %v285_v17 = vrot.slane %v266_v16, 1  ;;  %v304_v34 = vadd.f32 %v266_v16, %v266_v16 }
 0x13c   : > { %v271_v22 = vsel %vm270_vm12, %v268_v9, %v269_v4  ;;  %v273_v23 = vsel %vm270_vm12, %v269_v4, %v267_v7  ;;  %v287_v24 = vsel %vm286_vm13, %v284_v10, %v285_v17  ;;  %v289_v25 = vsel %vm286_vm13, %v285_v17, %v283_v8 }
 0x13d   : > { %v280_v26 = vsel %vm199_vm2, %v264_v62, %v273_v23  ;;  %v282_v27 = vsel %vm201_vm3, %v266_v16, %v271_v22  ;;  %v297_v28 = vsel %vm203_vm1, %v265_v63, %v287_v24  ;;  %v298_v30 = vsel %vm204_vm4, %v266_v16, %v289_v25 }
 0x13e   : > { %v299_v31 = vadd.f32 %v296_v20, %v280_v26  ;;  %v300_v32 = vadd.f32 %v297_v28, %v281_v19  ;;  %v301_v33 = vadd.f32 %v298_v30, %v282_v27 }
 0x140   : > { %v307_v35 = vadd.f32 %v304_v34, %v301_v33  ;;  %v305_v36 = vadd.f32 %v302_v18, %v299_v31  ;;  %v306_v37 = vadd.f32 %v303_v21, %v300_v32 }
 0x142   : > { %v310_v29 = vmul.f32 0.015625, %v307_v35  ;;  %v308_v38 = vmul.f32 0.015625, %v305_v36  ;;  %v309_v39 = vmul.f32 0.015625, %v306_v37 }
 0x144   : > { %311 = vst [vmem:[%s134_s30] sm:$0xff] %v308_v38  ;;  %312 = vst [vmem:[%s134_s30 + $0x8] sm:$0xff] %v309_v39 }
 0x145   : > { %313 = vst [vmem:[%s134_s30 + $0x10] sm:$0xff] %v310_v29 }
 0x146   : > { %516 = shalt.err (!%p513_p2)
}
 0x147   : > { %s517_s20 = scalar_lea.hbm %s783_s5, 384  ;;  %s521_s26 = scalar_lea.hbm %s830_s1, 768 }
 0x148   : > { %p518_p4 = scmp.ne.s32.totalorder %s783_s5, %s517_s20  ;;  %p522_p9 = scmp.lt.u32.totalorder %s783_s5, %s830_s1 }
 0x149   : > { %p523_p1 = scmp.lt.u32.totalorder %s521_s26, %s517_s20  ;;  %p525_p6 = scmp.lt.u32.totalorder %s517_s20, %s783_s5 }
 0x14a   : > { %p519_p5 = pnand %p518_p4, %p840_p11 }
 0x14b   : > { %p524_p3 = por %p523_p1, %p522_p9 }
 0x14c   : > { %p520_p7 = pneg %p519_p5 }
 0x14d   : > { %p526_p12 = por %p525_p6, %p524_p3 }
 0x14f   : > { %p527_p13 = pnand %p526_p12, %p520_p7 }
 0x151   : > { %530 = shalt.err (!%p527_p13)
}
 0x152   : > { %s579_s25 = smov 128   ;;  %s580_s16 = smov 8  }
 0x153   : > { %421 = dma.vmem_to_hbm [thread:$0]  (%p840_p11), %s785_s2, 384, %s783_s5, %s315_s10, %s579_s25, %s579_s25, %s580_s16  }
 0x154 PF: > { %s343_s27 = sand.u32 1, %s557_s6   ;;  %p841_p8 = scmp.ne.s32.totalorder %s834_s18, 0 }
 0x155   : > { %p842_p10 = scmp.ge.s32.totalorder %s569_s9, 2  ;;  %s344_s28 = scalar_lea.sflag [#allocation4], %s343_s27 }
 0x157   : > { %p428_p0 = pnand %p842_p10, %p841_p8 }
 0x159   : > { %552 = dma.done.wait (!%p428_p0), %s344_s28, 384  }
 0x15a   : > { %554 = vsyncadd (!%p428_p0), %s344_s28, 4294966912  ;;  %p14_p2 = scmp.ge.s32.totalorder %s616_s12, 4   ;;  %s843_s6 = smov %s561_s7 }
 0x15b   : > { %s844_s7 = smov %s565_s8  ;;  %s845_s8 = smov %s628_s15 }
 0x15c   : > { %s846_s9 = smov %s616_s12  ;;  %16 = sbr.rel (!%p14_p2) target bundleno = 5 (0x5), region = 69 }
 0x163   :  { %349 = vsyncpa [#allocation3], 1 }
 0x164   :  { %351 = vsyncpa [#allocation3 + $0x1], 1 }
 0x165   :  { %352 = vsyncpa [#allocation4], 1 }
 0x166   :  { %354 = vsyncpa [#allocation4 + $0x1], 1 }

</bundles_post_ra>
